<compile_context>
chip_gen: v6e
topology: v6e:2x2x1
jax: 0.10.0
libtpu: 0.0.40
codegen_flags: <defaults>
</compile_context>

<pallas_src>
import functools
import math

import jax
import jax.numpy as jnp
from jax.experimental import pallas as pl
from jax.experimental.pallas import tpu as pltpu


# ----------------------------------------------------------------------------
# Helpers
# ----------------------------------------------------------------------------

def _pick_tile(n, pref):
    """Largest divisor of n that is <= pref (power-of-two halving), else n."""
    if n <= pref:
        return n
    t = pref
    while t >= 8:
        if n % t == 0:
            return t
        t //= 2
    return n


# ----------------------------------------------------------------------------
# Dense kernels
# ----------------------------------------------------------------------------

def _linear_kernel(x_ref, w_ref, b_ref, o_ref, *, relu):
    """out = x @ w + b (+ReLU); single K pass, no accumulator scratch."""
    y = jnp.dot(x_ref[...].astype(jnp.bfloat16), w_ref[...].astype(jnp.bfloat16),
                preferred_element_type=jnp.float32) + b_ref[...]
    if relu:
        y = jnp.maximum(y, 0.0)
    o_ref[...] = y.astype(o_ref.dtype)


def _linear_acc_kernel(x_ref, w_ref, b_ref, o_ref, acc_ref, *, relu):
    """K-tiled variant with f32 VMEM accumulator (used only when K > tk)."""
    k = pl.program_id(2)

    @pl.when(k == 0)
    def _():
        acc_ref[...] = jnp.zeros_like(acc_ref)

    acc_ref[...] += jnp.dot(x_ref[...].astype(jnp.bfloat16),
                            w_ref[...].astype(jnp.bfloat16),
                            preferred_element_type=jnp.float32)

    @pl.when(k == pl.num_programs(2) - 1)
    def _():
        y = acc_ref[...] + b_ref[...]
        if relu:
            y = jnp.maximum(y, 0.0)
        o_ref[...] = y.astype(o_ref.dtype)


def linear(x, w, b, *, relu=False, out_dtype=jnp.bfloat16,
           tm_pref=256, tn_pref=1024, tk_pref=1024):
    """x: (M, K); w: (K, N) bf16 (pre-transposed); b: (N,) f32."""
    M, K = x.shape
    N = w.shape[1]
    tm = _pick_tile(M, tm_pref)
    tn = _pick_tile(N, tn_pref)
    tk = _pick_tile(K, tk_pref)
    nk = K // tk
    b2 = b.reshape(1, N)

    if nk == 1:
        return pl.pallas_call(
            functools.partial(_linear_kernel, relu=relu),
            out_shape=jax.ShapeDtypeStruct((M, N), out_dtype),
            grid=(M // tm, N // tn),
            in_specs=[
                pl.BlockSpec((tm, K), lambda i, j: (i, 0)),
                pl.BlockSpec((K, tn), lambda i, j: (0, j)),
                pl.BlockSpec((1, tn), lambda i, j: (0, j)),
            ],
            out_specs=pl.BlockSpec((tm, tn), lambda i, j: (i, j)),
            compiler_params=pltpu.CompilerParams(
                dimension_semantics=("parallel", "parallel")),
        )(x, w, b2)

    return pl.pallas_call(
        functools.partial(_linear_acc_kernel, relu=relu),
        out_shape=jax.ShapeDtypeStruct((M, N), out_dtype),
        grid=(M // tm, N // tn, nk),
        in_specs=[
            pl.BlockSpec((tm, tk), lambda i, j, k: (i, k)),
            pl.BlockSpec((tk, tn), lambda i, j, k: (k, j)),
            pl.BlockSpec((1, tn), lambda i, j, k: (0, j)),
        ],
        out_specs=pl.BlockSpec((tm, tn), lambda i, j, k: (i, j)),
        scratch_shapes=[pltpu.VMEM((tm, tn), jnp.float32)],
        compiler_params=pltpu.CompilerParams(
            dimension_semantics=("parallel", "parallel", "arbitrary")),
    )(x, w, b2)


def _fuse_fc_kernel(x1_ref, w1_ref, b1_ref, x2_ref, w2_ref, b2_ref, o_ref):
    """relu(x1 @ w1 + b1) + relu(x2 @ w2 + b2) in one pass (fc1/fc2/add fusion)."""
    a = jnp.dot(x1_ref[...].astype(jnp.bfloat16), w1_ref[...].astype(jnp.bfloat16),
                preferred_element_type=jnp.float32) + b1_ref[...]
    c = jnp.dot(x2_ref[...].astype(jnp.bfloat16), w2_ref[...].astype(jnp.bfloat16),
                preferred_element_type=jnp.float32) + b2_ref[...]
    o_ref[...] = (jnp.maximum(a, 0.0) + jnp.maximum(c, 0.0)).astype(o_ref.dtype)


def fuse_fc(x1, w1, b1, x2, w2, b2, *, out_dtype=jnp.bfloat16,
            tm_pref=256, tn_pref=512):
    M, K1 = x1.shape
    K2 = x2.shape[1]
    N = w1.shape[1]
    tm = _pick_tile(M, tm_pref)
    tn = _pick_tile(N, tn_pref)
    return pl.pallas_call(
        _fuse_fc_kernel,
        out_shape=jax.ShapeDtypeStruct((M, N), out_dtype),
        grid=(M // tm, N // tn),
        in_specs=[
            pl.BlockSpec((tm, K1), lambda i, j: (i, 0)),
            pl.BlockSpec((K1, tn), lambda i, j: (0, j)),
            pl.BlockSpec((1, tn), lambda i, j: (0, j)),
            pl.BlockSpec((tm, K2), lambda i, j: (i, 0)),
            pl.BlockSpec((K2, tn), lambda i, j: (0, j)),
            pl.BlockSpec((1, tn), lambda i, j: (0, j)),
        ],
        out_specs=pl.BlockSpec((tm, tn), lambda i, j: (i, j)),
        compiler_params=pltpu.CompilerParams(
            dimension_semantics=("parallel", "parallel")),
    )(x1, w1, b1.reshape(1, N), x2, w2, b2.reshape(1, N))


# ----------------------------------------------------------------------------
# Bidirectional GRU layer: grid=(2,) over directions ("parallel" -> one per TC on
# v7x), in-kernel fori_loop over time, output written directly as (T, B, 2H).
# ----------------------------------------------------------------------------

def _bigru_kernel(xg_ref, whh_ref, bhh_ref, o_ref, h_ref):
    T, B, H = o_ref.shape
    H3 = 3 * H
    rev = pl.program_id(0) == 1          # direction 1 walks time backwards

    h_ref[...] = jnp.zeros_like(h_ref)   # h0 = 0 (PyTorch default)

    def step(s, carry):
        t = jnp.where(rev, T - 1 - s, s)
        h_prev = h_ref[...]                                                # (B, H) f32
        hg = jnp.dot(h_prev.astype(jnp.bfloat16), whh_ref[0],
                     preferred_element_type=jnp.float32) + bhh_ref[0]      # (B, 3H)
        xg = xg_ref[t].astype(jnp.float32)                                 # (B, 3H)

        r = jax.nn.sigmoid(xg[:, 0:H] + hg[:, 0:H])
        z = jax.nn.sigmoid(xg[:, H:2 * H] + hg[:, H:2 * H])
        n = jnp.tanh(xg[:, 2 * H:H3] + r * hg[:, 2 * H:H3])
        h_new = (1.0 - z) * n + z * h_prev

        h_ref[...] = h_new
        o_ref[t] = h_new.astype(o_ref.dtype)
        return carry

    jax.lax.fori_loop(0, T, step, 0)


def bigru_layer(xg_tb, T, B, whh_stack, bhh_stack):
    """Fused bidirectional GRU recurrence.

    xg_tb:     (T*B, 6H) bf16 input-gate pre-activations, time-major;
               columns [0:3H] forward direction, [3H:6H] backward direction.
    whh_stack: (2, H, 3H) bf16 per-direction hidden weights (already transposed).
    bhh_stack: (2, 1, 3H) f32 per-direction hidden biases.
    Returns (T*B, 2H) bf16: [h_fwd | h_bwd] per row, both in original time order.
    """
    H6 = xg_tb.shape[1]
    H = H6 // 6
    H3 = 3 * H
    out = pl.pallas_call(
        _bigru_kernel,
        out_shape=jax.ShapeDtypeStruct((T, B, 2 * H), jnp.bfloat16),
        grid=(2,),
        in_specs=[
            pl.BlockSpec((T, B, H3), lambda d: (0, 0, d)),   # this direction's gates
            pl.BlockSpec((1, H, H3), lambda d: (d, 0, 0)),   # Whh^T
            pl.BlockSpec((1, 1, H3), lambda d: (d, 0, 0)),   # b_hh
        ],
        out_specs=pl.BlockSpec((T, B, H), lambda d: (0, 0, d)),  # disjoint lane halves
        scratch_shapes=[pltpu.VMEM((B, H), jnp.float32)],
        compiler_params=pltpu.CompilerParams(
            dimension_semantics=("parallel",)),
    )(xg_tb.reshape(T, B, H6), whh_stack, bhh_stack)
    return out.reshape(T * B, 2 * H)


# ----------------------------------------------------------------------------
# Module composition (glue in plain JAX; all slabs kept time-major)
# ----------------------------------------------------------------------------

def rnn_forward(x_tb, T, B, p):
    """RNN module on time-major rows. x_tb: (T*B, F)."""
    # linear1 -> dropout -> ReLU
    # TODO(synk): the reference uses F.dropout(...) whose default is training=True;
    # implemented as identity (deterministic inference semantics).
    h0 = linear(x_tb, p['l1_w'], p['l1_b'], relu=True)                 # (T*B, H) bf16

    # bi-GRU layer 0
    xg0 = linear(h0, p['gru0_wih'], p['gru0_bih'])                     # (T*B, 6H) bf16
    h01 = bigru_layer(xg0, T, B, p['gru0_whh'], p['gru0_bhh'])         # (T*B, 2H) bf16

    # bi-GRU layer 1 (input [h_fwd | h_bwd] comes straight out of the GRU kernel)
    xg1 = linear(h01, p['gru1_wih'], p['gru1_bih'])                    # (T*B, 6H) bf16
    h11 = bigru_layer(xg1, T, B, p['gru1_whh'], p['gru1_bhh'])         # (T*B, 2H) bf16

    # linear2 (2H -> out), output padded to 128 lanes for dense stores
    out = linear(h11, p['l2_w_pad'], p['l2_b_pad'], out_dtype=jnp.float32)
    return out[:, :p['l2_out_dim']]                                    # (T*B, 72)


def fusion_regressor_forward(data, params):
    depths = data['depths']
    B, T, C, Hd, Wd = depths.shape

    # TODO(synk): PointNet2Encoder definition not provided; its per-frame features
    # are supplied as data['enc_feats'] (B, T, F).
    enc = data['enc_feats']
    # TODO(synk): hmr/ResNet feature_extractor not provided; its per-frame features
    # are supplied as data['img_feats'] (B*T, 2F).
    img = data['img_feats']

    F_ = enc.shape[-1]
    F2 = img.shape[-1]

    # Pad batch to a multiple of 8 (sublane-dense time-major rows & GRU stores);
    # padded rows are independent and sliced away at the end.
    Bp = ((B + 7) // 8) * 8
    enc_b = enc.astype(jnp.bfloat16)                        # cast before transpose
    img_b = img.reshape(B, T, F2).astype(jnp.bfloat16)
    if Bp != B:
        enc_b = jnp.pad(enc_b, ((0, Bp - B), (0, 0), (0, 0)))
        img_b = jnp.pad(img_b, ((0, Bp - B), (0, 0), (0, 0)))
    enc_tb = enc_b.transpose(1, 0, 2).reshape(T * Bp, F_)
    img_tb = img_b.transpose(1, 0, 2).reshape(T * Bp, F2)

    # fc1 / fc2 / add fused into one kernel (nn.Dropout identity at inference).
    x_tb = fuse_fc(enc_tb, params['fc1_w'], params['fc1_b'],
                   img_tb, params['fc2_w'], params['fc2_b'])           # (T*Bp, F) bf16

    joints_tb = rnn_forward(x_tb, T, Bp, params['pose_s1'])            # (T*Bp, 72)
    full_joints = joints_tb.reshape(T, Bp, -1)[:, :B].transpose(1, 0, 2)  # (B, T, 72)

    # TODO(synk): train_step == 'second' (pose_s2 + rot6d_to_rotmat) not executed.
    pred = dict(data)
    pred['pred_full_joints'] = full_joints.reshape(B, T, 24, 3)
    return pred


# ----------------------------------------------------------------------------
# Deterministic parameter init (PyTorch-style uniform(-1/sqrt(fan), +...))
# bf16 weights for the MXU, f32 biases.
# ----------------------------------------------------------------------------

def _uni(key, shape, fan, dtype=jnp.float32):
    s = 1.0 / math.sqrt(fan)
    return jax.random.uniform(key, shape, jnp.float32, -s, s).astype(dtype)


def init_params(key, F, H, out_dim, out_pad=128):
    keys = iter(jax.random.split(key, 64))

    def lin(din, dout):
        return (_uni(next(keys), (din, dout), din, jnp.bfloat16),
                _uni(next(keys), (dout,), din))

    def gru_dir(din, h):
        w_ih_t = _uni(next(keys), (din, 3 * h), h, jnp.bfloat16)
        b_ih = _uni(next(keys), (3 * h,), h)
        w_hh_t = _uni(next(keys), (h, 3 * h), h, jnp.bfloat16)
        b_hh = _uni(next(keys), (3 * h,), h)
        return w_ih_t, b_ih, w_hh_t, b_hh

    fc1_w, fc1_b = lin(F, F)
    fc2_w, fc2_b = lin(2 * F, F)
    l1_w, l1_b = lin(F, H)

    # GRU layer 0 (input H) and layer 1 (input 2H), forward & backward directions.
    wih0f, bih0f, whh0f, bhh0f = gru_dir(H, H)
    wih0b, bih0b, whh0b, bhh0b = gru_dir(H, H)
    wih1f, bih1f, whh1f, bhh1f = gru_dir(2 * H, H)
    wih1b, bih1b, whh1b, bhh1b = gru_dir(2 * H, H)

    # linear2: (2H -> out_dim), padded to out_pad lanes for dense stores.
    l2_w = _uni(next(keys), (2 * H, out_dim), 2 * H)
    l2_b = _uni(next(keys), (out_dim,), 2 * H)
    l2_w_pad = (jnp.zeros((2 * H, out_pad), jnp.float32)
                .at[:, :out_dim].set(l2_w).astype(jnp.bfloat16))
    l2_b_pad = jnp.zeros((out_pad,), jnp.float32).at[:out_dim].set(l2_b)

    pose_s1 = {
        'l1_w': l1_w, 'l1_b': l1_b,
        # input projections of both directions packed into one (din, 6H) matmul
        'gru0_wih': jnp.concatenate([wih0f, wih0b], axis=1),   # (H, 6H)
        'gru0_bih': jnp.concatenate([bih0f, bih0b], axis=0),   # (6H,)
        'gru0_whh': jnp.stack([whh0f, whh0b]),                 # (2, H, 3H)
        'gru0_bhh': jnp.stack([bhh0f.reshape(1, -1), bhh0b.reshape(1, -1)]),
        'gru1_wih': jnp.concatenate([wih1f, wih1b], axis=1),   # (2H, 6H)
        'gru1_bih': jnp.concatenate([bih1f, bih1b], axis=0),
        'gru1_whh': jnp.stack([whh1f, whh1b]),
        'gru1_bhh': jnp.stack([bhh1f.reshape(1, -1), bhh1b.reshape(1, -1)]),
        'l2_w_pad': l2_w_pad, 'l2_b_pad': l2_b_pad, 'l2_out_dim': out_dim,
    }
    return {'fc1_w': fc1_w, 'fc1_b': fc1_b,
            'fc2_w': fc2_w, 'fc2_b': fc2_b,
            'pose_s1': pose_s1}


# ----------------------------------------------------------------------------
# Main
# ----------------------------------------------------------------------------

if __name__ == "__main__":
    # Small shapes consistent with the module (original: F=H=1024, img feat=2048).
    B, T, C, Hd, Wd = 2, 8, 1, 16, 16
    F = 128          # stand-in for the 1024-d encoder / hidden width
    H = 128          # GRU hidden; multiple of 128 keeps r/z/n gate slices lane-aligned
    OUT = 24 * 3     # 72, reshaped to (24, 3)

    key = jax.random.PRNGKey(0)
    k_p, k_d, k_e, k_i = jax.random.split(key, 4)

    params = init_params(k_p, F, H, OUT)
    data = {
        'depths': jax.random.normal(k_d, (B, T, C, Hd, Wd), jnp.float32),
        'enc_feats': jax.random.normal(k_e, (B, T, F), jnp.float32),
        'img_feats': jax.random.normal(k_i, (B * T, 2 * F), jnp.float32),
    }

    pred = fusion_regressor_forward(data, params)
    out = jax.block_until_ready(pred['pred_full_joints'])
    assert out.shape == (B, T, 24, 3)
    assert bool(jnp.isfinite(out).all())
    print("KERNEL_OK")
</pallas_src>

<mosaic_0001>
module attributes {stable_mosaic.version = 11 : i64} {
  func.func @_fuse_fc_kernel(%arg0: i32, %arg1: i32, %arg2: memref<64x128xbf16, #tpu.memory_space<vmem>>, %arg3: memref<128x128xbf16, #tpu.memory_space<vmem>>, %arg4: memref<1x128xf32, #tpu.memory_space<vmem>>, %arg5: memref<64x256xbf16, #tpu.memory_space<vmem>>, %arg6: memref<256x128xbf16, #tpu.memory_space<vmem>>, %arg7: memref<1x128xf32, #tpu.memory_space<vmem>>, %arg8: memref<64x128xbf16, #tpu.memory_space<vmem>>) attributes {dimension_semantics = [#tpu.dimension_semantics<parallel>, #tpu.dimension_semantics<parallel>], iteration_bounds = array<i64: 1, 1>, scalar_prefetch = 0 : i64, scratch_operands = 0 : i64, tpu.core_type = #tpu.core_type<tc>, window_params = [{transform_indices = @transform_0, window_bounds = array<i64: 64, 128>}, {transform_indices = @transform_1, window_bounds = array<i64: 128, 128>}, {transform_indices = @transform_2, window_bounds = array<i64: 1, 128>}, {transform_indices = @transform_3, window_bounds = array<i64: 64, 256>}, {transform_indices = @transform_4, window_bounds = array<i64: 256, 128>}, {transform_indices = @transform_5, window_bounds = array<i64: 1, 128>}, {transform_indices = @transform_6, window_bounds = array<i64: 64, 128>}]} {
    %c0 = arith.constant 0 : index
    %c0_0 = arith.constant 0 : index
    %0 = vector.load %arg2[%c0, %c0_0] : memref<64x128xbf16, #tpu.memory_space<vmem>>, vector<64x128xbf16>
    %c0_1 = arith.constant 0 : index
    %c0_2 = arith.constant 0 : index
    %1 = vector.load %arg3[%c0_1, %c0_2] : memref<128x128xbf16, #tpu.memory_space<vmem>>, vector<128x128xbf16>
    %cst = arith.constant dense<0.000000e+00> : vector<64x128xf32>
    %2 = tpu.matmul %0, %1, %cst {dimension_numbers = #tpu.dot_dimension_numbers<[1], [0], [0], [1], [0, 0, 1, 1], [], []>} : vector<64x128xbf16>, vector<128x128xbf16>, vector<64x128xf32> -> vector<64x128xf32>
    %c0_3 = arith.constant 0 : index
    %c0_4 = arith.constant 0 : index
    %3 = vector.load %arg4[%c0_3, %c0_4] : memref<1x128xf32, #tpu.memory_space<vmem>>, vector<1x128xf32>
    %4 = vector.broadcast %3 : vector<1x128xf32> to vector<64x128xf32>
    %5 = arith.addf %2, %4 : vector<64x128xf32>
    %c0_5 = arith.constant 0 : index
    %c0_6 = arith.constant 0 : index
    %6 = vector.load %arg5[%c0_5, %c0_6] : memref<64x256xbf16, #tpu.memory_space<vmem>>, vector<64x256xbf16>
    %c0_7 = arith.constant 0 : index
    %c0_8 = arith.constant 0 : index
    %7 = vector.load %arg6[%c0_7, %c0_8] : memref<256x128xbf16, #tpu.memory_space<vmem>>, vector<256x128xbf16>
    %cst_9 = arith.constant dense<0.000000e+00> : vector<64x128xf32>
    %8 = tpu.matmul %6, %7, %cst_9 {dimension_numbers = #tpu.dot_dimension_numbers<[1], [0], [0], [1], [0, 0, 1, 1], [], []>} : vector<64x256xbf16>, vector<256x128xbf16>, vector<64x128xf32> -> vector<64x128xf32>
    %c0_10 = arith.constant 0 : index
    %c0_11 = arith.constant 0 : index
    %9 = vector.load %arg7[%c0_10, %c0_11] : memref<1x128xf32, #tpu.memory_space<vmem>>, vector<1x128xf32>
    %10 = vector.broadcast %9 : vector<1x128xf32> to vector<64x128xf32>
    %11 = arith.addf %8, %10 : vector<64x128xf32>
    %cst_12 = arith.constant 0.000000e+00 : f32
    %12 = vector.broadcast %cst_12 : f32 to vector<64x128xf32>
    %13 = arith.maximumf %5, %12 : vector<64x128xf32>
    %cst_13 = arith.constant 0.000000e+00 : f32
    %14 = vector.broadcast %cst_13 : f32 to vector<64x128xf32>
    %15 = arith.maximumf %11, %14 : vector<64x128xf32>
    %16 = arith.addf %13, %15 : vector<64x128xf32>
    %17 = arith.truncf %16 : vector<64x128xf32> to vector<64x128xbf16>
    %c0_14 = arith.constant 0 : index
    %c0_15 = arith.constant 0 : index
    %18 = vector.load %arg8[%c0_14, %c0_15] : memref<64x128xbf16, #tpu.memory_space<vmem>>, vector<64x128xbf16>
    tpu.vector_store %arg8[%c0_14, %c0_15], %17 {strides = array<i32>} : memref<64x128xbf16, #tpu.memory_space<vmem>>, vector<64x128xbf16>,
    return
  }
  func.func @transform_0(%arg0: i32, %arg1: i32) -> (i32, i32) {
    %c0_i32 = arith.constant 0 : i32
    %c0_i32_0 = arith.constant 0 : i32
    return %arg0, %c0_i32 : i32, i32
  }
  func.func @transform_1(%arg0: i32, %arg1: i32) -> (i32, i32) {
    %c0_i32 = arith.constant 0 : i32
    %c0_i32_0 = arith.constant 0 : i32
    return %c0_i32, %arg1 : i32, i32
  }
  func.func @transform_2(%arg0: i32, %arg1: i32) -> (i32, i32) {
    %c0_i32 = arith.constant 0 : i32
    %c0_i32_0 = arith.constant 0 : i32
    return %c0_i32, %arg1 : i32, i32
  }
  func.func @transform_3(%arg0: i32, %arg1: i32) -> (i32, i32) {
    %c0_i32 = arith.constant 0 : i32
    %c0_i32_0 = arith.constant 0 : i32
    return %arg0, %c0_i32 : i32, i32
  }
  func.func @transform_4(%arg0: i32, %arg1: i32) -> (i32, i32) {
    %c0_i32 = arith.constant 0 : i32
    %c0_i32_0 = arith.constant 0 : i32
    return %c0_i32, %arg1 : i32, i32
  }
  func.func @transform_5(%arg0: i32, %arg1: i32) -> (i32, i32) {
    %c0_i32 = arith.constant 0 : i32
    %c0_i32_0 = arith.constant 0 : i32
    return %c0_i32, %arg1 : i32, i32
  }
  func.func @transform_6(%arg0: i32, %arg1: i32) -> (i32, i32) {
    %c0_i32 = arith.constant 0 : i32
    return %arg0, %arg1 : i32, i32
  }
}

</mosaic_0001>

<bundles_post_ra>
// kernel: tpu_custom_call.1
= control target key start
LH: loop header
LB: loop body
LE: loop exit
PB: predicated region body
PF: predicated region fallthrough
CT: control target
= control target key end

     0   :  { %11 = vsyncpa [#allocation3], 0  ;;  %s986_s0 = inlined_call_operand.hbm [shape: bf16[64,128], index: 0, kind: input, shape index: {}]   ;;  %s987_s1 = inlined_call_operand.hbm [shape: bf16[128,128], index: 1, kind: input, shape index: {}]   ;;  %s988_s2 = inlined_call_operand.vmem [shape: f32[1,128], index: 2, kind: input, shape index: {}]   ;;  %s989_s3 = inlined_call_operand.hbm [shape: bf16[64,256], index: 3, kind: input, shape index: {}]   ;;  %s990_s4 = inlined_call_operand.hbm [shape: bf16[256,128], index: 4, kind: input, shape index: {}]   ;;  %s991_s5 = inlined_call_operand.vmem [shape: f32[1,128], index: 5, kind: input, shape index: {}]   ;;  %s992_s6 = inlined_call_operand.hbm [shape: bf16[64,128], index: 6, kind: output, shape index: {}]  }
   0x1   :  { %12 = vsyncpa [#allocation6], 0 }
   0x2   :  { %13 = vsyncpa [#allocation9], 0 }
   0x3   :  { %14 = vsyncpa [#allocation4], 0  ;;  %s889_s21 = smov [#allocation5]   ;;  %s890_s23 = smov [#allocation2]  }
   0x4   :  { %s32_s22 = sshll.u32 %s889_s21, 4  ;;  %s20_s24 = sshll.u32 %s890_s23, 4  ;;  %s33_s22 = int_to_ptr.vmem [resolvable:$true] %s32_s22  ;;  %s21_s24 = int_to_ptr.vmem [resolvable:$true] %s20_s24 }
   0x5   :  { %s789_s25 = scalar_lea.vmem %s33_s22, 1024  ;;  %p794_p1 = scmp.lt.s32.totalorder %s33_s22, %s33_s22 }
   0x6   :  { %p790_p0 = scmp.ne.s32.totalorder %s33_s22, %s789_s25  ;;  %p795_p2 = scmp.lt.s32.totalorder %s789_s25, %s789_s25 }
   0x8   :  { %p796_p3 = por %p795_p2, %p794_p1 }
   0xa   :  { %p797_p4 = pnand %p796_p3, %p790_p0 }
   0xc   :  { %800 = shalt.err (!%p797_p4)
}
   0xd   :  { %s891_s26 = smov 64   ;;  %s892_s27 = smov 4  }
   0xe   :  { %38 = dma.hbm_to_vmem [thread:$0]  %s987_s1, 1024, %s33_s22, [#allocation6], %s891_s26, %s891_s26, %s892_s27  }
   0xf   :  { %s809_s30 = scalar_lea.vmem %s21_s24, 512  ;;  %p814_p6 = scmp.lt.s32.totalorder %s21_s24, %s21_s24 }
  0x10   :  { %p810_p5 = scmp.ne.s32.totalorder %s21_s24, %s809_s30  ;;  %p815_p7 = scmp.lt.s32.totalorder %s809_s30, %s809_s30 }
  0x12   :  { %p816_p8 = por %p815_p7, %p814_p6 }
  0x14   :  { %p817_p9 = pnand %p816_p8, %p810_p5 }
  0x16   :  { %820 = shalt.err (!%p817_p9)
}
  0x17   :  { %26 = dma.hbm_to_vmem [thread:$0]  %s986_s0, 512, %s21_s24, [#allocation3], %s891_s26, %s891_s26, %s892_s27  }
  0x18   :  { %s893_s9 = smov [#allocation7]  }
  0x19   :  { %s46_s10 = sshll.u32 %s893_s9, 4  ;;  %s47_s10 = int_to_ptr.vmem [resolvable:$true] %s46_s10 }
  0x1a   :  { %s829_s11 = scalar_lea.vmem %s47_s10, 1024  ;;  %p834_p11 = scmp.lt.s32.totalorder %s47_s10, %s47_s10 }
  0x1b   :  { %p830_p10 = scmp.ne.s32.totalorder %s47_s10, %s829_s11  ;;  %p835_p12 = scmp.lt.s32.totalorder %s829_s11, %s829_s11 }
  0x1d   :  { %p836_p13 = por %p835_p12, %p834_p11 }
  0x1f   :  { %p837_p0 = pnand %p836_p13, %p830_p10 }
  0x21   :  { %840 = shalt.err (!%p837_p0)
}
  0x22   :  { %s894_s1 = smov 128   ;;  %s895_s12 = smov 8  }
  0x23   :  { %52 = dma.hbm_to_vmem [thread:$0]  %s989_s3, 1024, %s47_s10, [#allocation6], %s894_s1, %s894_s1, %s895_s12  }
  0x24   :  { %s896_s15 = smov [#allocation8]  }
  0x25   :  { %s58_s16 = sshll.u32 %s896_s15, 4  ;;  %s59_s16 = int_to_ptr.vmem [resolvable:$true] %s58_s16 }
  0x26   :  { %s849_s0 = scalar_lea.vmem %s59_s16, 2048  ;;  %p854_p2 = scmp.lt.s32.totalorder %s59_s16, %s59_s16 }
  0x27   :  { %p850_p1 = scmp.ne.s32.totalorder %s59_s16, %s849_s0  ;;  %p855_p3 = scmp.lt.s32.totalorder %s849_s0, %s849_s0 }
  0x29   :  { %p856_p4 = por %p855_p3, %p854_p2 }
  0x2b   :  { %p857_p5 = pnand %p856_p4, %p850_p1 }
  0x2d   :  { %860 = shalt.err (!%p857_p5)
}
  0x2e   :  { %64 = dma.hbm_to_vmem [thread:$0]  %s990_s4, 2048, %s59_s16, [#allocation9], %s891_s26, %s891_s26, %s892_s27  }
  0x2f   :  { %881 = dma.done.wait [#allocation3], 512  }
  0x30   :  { %882 = vsyncadd [#allocation3], 4294966784 }
  0x31   :  { %883 = dma.done.wait [#allocation6], 2048  }
  0x32   :  { %884 = vsyncadd [#allocation6], 4294965248 }
  0x33   :  { %885 = dma.done.wait [#allocation9], 2048  }
  0x34   :  { %886 = vsyncadd [#allocation9], 4294965248  ;;  %v741_v0 = vld [vmem:[#allocation8 + $0x78] sm:$0xff]   ;;  %v744_v3 = vld [vmem:[#allocation8 + $0x70] sm:$0xff]  }
  0x35   :  { %v742_v1 = vld [vmem:[#allocation8 + $0x38] sm:$0xff]   ;;  %668 = vmatprep.subr.bf16.mxu1 %v741_v0  ;;  %v745_v4 = vld [vmem:[#allocation8 + $0x30] sm:$0xff]   ;;  %v747_v6 = vld [vmem:[#allocation8 + $0x68] sm:$0xff]  }
  0x36   :  { %v743_v2 = vld [vmem:[#allocation5 + $0x38] sm:$0xff]   ;;  %669 = vmatpush3.bf16.msra.mxu1 %v742_v1  ;;  %v746_v5 = vld [vmem:[#allocation5 + $0x30] sm:$0xff]   ;;  %v748_v7 = vld [vmem:[#allocation8 + $0x28] sm:$0xff]  }
  0x37   :  { %708 = vmatprep.subr.bf16.mxu0 %v743_v2  ;;  %670 = vmatprep.subr.bf16.mxu1 %v744_v3  ;;  %v749_v8 = vld [vmem:[#allocation5 + $0x28] sm:$0xff]   ;;  %v750_v9 = vld [vmem:[#allocation8 + $0x60] sm:$0xff]   ;;  %v753_v12 = vld [vmem:[#allocation8 + $0x58] sm:$0xff]  }
  0x38   :  { %709 = vmatpush3.bf16.msra.mxu0 %v743_v2  ;;  %v751_v10 = vld [vmem:[#allocation8 + $0x20] sm:$0xff]   ;;  %v755_v13 = vld [vmem:[#allocation5 + $0x18] sm:$0xff]   ;;  %v756_v15 = vld [vmem:[#allocation8 + $0x50] sm:$0xff]  }
  0x39   :  { %710 = vmatprep.subr.bf16.mxu0 %v746_v5  ;;  %v752_v11 = vld [vmem:[#allocation5 + $0x20] sm:$0xff]   ;;  %v754_v14 = vld [vmem:[#allocation8 + $0x18] sm:$0xff]   ;;  %v758_v16 = vld [vmem:[#allocation5 + $0x10] sm:$0xff]  }
  0x3a   :  { %671 = vmatpush3.bf16.msra.mxu1 %v745_v4  ;;  %v757_v17 = vld [vmem:[#allocation8 + $0x10] sm:$0xff]   ;;  %v759_v18 = vld [vmem:[#allocation8 + $0x48] sm:$0xff]   ;;  %v762_v21 = vld [vmem:[#allocation8 + $0x40] sm:$0xff]  }
  0x3b   :  { %672 = vmatprep.subr.bf16.mxu1 %v747_v6  ;;  %v760_v19 = vld [vmem:[#allocation8 + $0x8] sm:$0xff]   ;;  %v764_v22 = vld [vmem:[#allocation5] sm:$0xff]   ;;  %v770_v27 = vld [vmem:[#allocation7 + $0x14] ss:$8 sps:$4 sm:$0xff]  }
  0x3c   :  { %711 = vmatpush3.bf16.msra.mxu0 %v746_v5  ;;  %v761_v20 = vld [vmem:[#allocation5 + $0x8] sm:$0xff]   ;;  %v768_v24 = vld [vmem:[#allocation2] sm:$0xff]   ;;  %v776_v29 = vld [vmem:[#allocation2 + $0x10] sm:$0xff]  }
  0x3d   :  { %712 = vmatprep.subr.bf16.mxu0 %v749_v8  ;;  %v767_v23 = vld [vmem:[#allocation7 + $0x4] ss:$8 sps:$4 sm:$0xff]   ;;  %724 = vmatprep.mubr.bf16.mxu0 %v768_v24  ;;  %v765_v26 = vld [vmem:[#allocation7] ss:$8 sps:$4 sm:$0xff]   ;;  %v772_v30 = vld [vmem:[#allocation7 + $0x10] ss:$8 sps:$4 sm:$0xff]  }
  0x3e   :  { %673 = vmatpush3.bf16.msra.mxu1 %v748_v7  ;;  %v763_v25 = vld [vmem:[#allocation8] sm:$0xff]   ;;  %463 = vmatprep.mubr.bf16.mxu1 %v767_v23  ;;  %v769_v28 = vld [vmem:[#allocation2 + $0x8] sm:$0xff]   ;;  %v777_v32 = vld [vmem:[#allocation2 + $0x18] sm:$0xff]  }
  0x3f   :  { %674 = vmatprep.subr.bf16.mxu1 %v750_v9  ;;  %v773_v31 = vld [vmem:[#allocation7 + $0x24] ss:$8 sps:$4 sm:$0xff]   ;;  %v775_v33 = vld [vmem:[#allocation7 + $0x20] ss:$8 sps:$4 sm:$0xff]   ;;  %v778_v34 = vld [vmem:[#allocation7 + $0x34] ss:$8 sps:$4 sm:$0xff]  }
  0x40   :  { %713 = vmatpush3.bf16.msra.mxu0 %v749_v8  ;;  %v780_v35 = vld [vmem:[#allocation7 + $0x30] ss:$8 sps:$4 sm:$0xff]   ;;  %v957_v38 = vld [vmem:[%s988_s2] ss:$0 sm:$0xff]  ;;  %s897_s2 = smov [#allocation10]  }
  0x41   :  { %714 = vmatprep.subr.bf16.mxu0 %v752_v11  ;;  %v962_v39 = vld [vmem:[%s991_s5] ss:$0 sm:$0xff]  ;;  %s565_s5 = sshll.u32 %s897_s2, 4  ;;  %s566_s5 = int_to_ptr.vmem [resolvable:$true] %s565_s5 }
  0x42   :  { %675 = vmatpush3.bf16.msra.mxu1 %v751_v10  ;;  %s861_s21 = scalar_lea.vmem %s566_s5, 512  ;;  %p866_p7 = scmp.lt.s32.totalorder %s566_s5, %s566_s5 }
  0x43   :  { %676 = vmatprep.subr.bf16.mxu1 %v753_v12  ;;  %p862_p6 = scmp.ne.s32.totalorder %s566_s5, %s861_s21  ;;  %p867_p8 = scmp.lt.s32.totalorder %s861_s21, %s861_s21 }
  0x44   :  { %715 = vmatpush3.bf16.msra.mxu0 %v752_v11 }
  0x45   :  { %716 = vmatprep.subr.bf16.mxu0 %v755_v13  ;;  %p868_p9 = por %p867_p8, %p866_p7 }
  0x46   :  { %677 = vmatpush3.bf16.msra.mxu1 %v754_v14 }
  0x47   :  { %678 = vmatprep.subr.bf16.mxu1 %v756_v15  ;;  %p869_p10 = pnand %p868_p9, %p862_p6 }
  0x48   :  { %717 = vmatpush3.bf16.msra.mxu0 %v755_v13 }
  0x49   :  { %718 = vmatprep.subr.bf16.mxu0 %v758_v16 }
  0x4a   :  { %679 = vmatpush3.bf16.msra.mxu1 %v757_v17 }
  0x4b   :  { %680 = vmatprep.subr.bf16.mxu1 %v759_v18 }
  0x4c   :  { %719 = vmatpush3.bf16.msra.mxu0 %v758_v16 }
  0x4d   :  { %720 = vmatprep.subr.bf16.mxu0 %v761_v20 }
  0x4e   :  { %681 = vmatpush3.bf16.msra.mxu1 %v760_v19 }
  0x4f   :  { %682 = vmatprep.subr.bf16.mxu1 %v762_v21 }
  0x50   :  { %721 = vmatpush3.bf16.msra.mxu0 %v761_v20 }
  0x51   :  { %722 = vmatprep.subr.bf16.mxu0 %v764_v22 }
  0x52   :  { %683 = vmatpush3.bf16.msra.mxu1 %v763_v25 }
  0x54   :  { %723 = vmatpush3.bf16.msra.mxu0 %v764_v22 }
  0x55   :  { %464 = vmatmul.mubr.bf16.vlgmr.msra.gmra.mxu1 %v765_v26 }
  0x56   :  { %471 = vmatprep.mubr.bf16.mxu1 %v770_v27 }
  0x57   :  { %725 = vmatmul.mubr.bf16.vlgmr.msra.gmra.mxu0 %v769_v28 }
  0x58   :  { %728 = vmatprep.mubr.bf16.mxu0 %v776_v29 }
  0x5d   :  { %472 = vmatmul.mubr.bf16.gmra.mxu1 %v772_v30 }
  0x5e   :  { %479 = vmatprep.mubr.bf16.mxu1 %v773_v31 }
  0x5f   :  { %729 = vmatmul.mubr.bf16.gmra.mxu0 %v777_v32 }
  0x65   :  { %480 = vmatmul.mubr.bf16.gmra.mxu1 %v775_v33 }
  0x66   :  { %487 = vmatprep.mubr.bf16.mxu1 %v778_v34 }
  0x6d   :  { %488 = vmatmul.mubr.bf16.gmra.mxu1 %v780_v35 }
 0x115   :  { %v684_v36 = vpop.f32.mrf.mxu1 }
 0x117   :  { %v726_v37 = vpop.f32.mrf.mxu0  ;;  %v685_v40 = vpop.f32.mrf.mxu1 }
 0x118   :  { %v686_v41 = vadd.f32 %v685_v40, %v684_v36  ;;  %v226_v60 = vadd.f32 %v726_v37, %v957_v38 }
 0x119   :  { %v217_v42 = vpop.f32.mrf.mxu0  ;;  %v687_v43 = vpop.f32.mrf.mxu1 }
 0x11a   :  { %v466_v44 = vadd.f32 %v686_v41, %v962_v39  ;;  %v218_v45 = vadd.f32 %v957_v38, %v217_v42  ;;  %v498_v8 = vmax.f32 %v226_v60, 0.0 }
 0x11b   :  { %v727_v46 = vpop.f32.mrf.mxu0  ;;  %v688_v47 = vpop.f32.mrf.mxu1 }
 0x11c   :  { %v689_v48 = vadd.f32 %v688_v47, %v687_v43  ;;  %v504_v51 = vmax.f32 %v466_v44, 0.0  ;;  %v496_v52 = vmax.f32 %v218_v45, 0.0  ;;  %v229_v0 = vadd.f32 %v727_v46, %v957_v38 }
 0x11d   :  { %v220_v49 = vpop.f32.mrf.mxu0  ;;  %v690_v50 = vpop.f32.mrf.mxu1 }
 0x11e   :  { %v469_v53 = vadd.f32 %v689_v48, %v962_v39  ;;  %v221_v54 = vadd.f32 %v957_v38, %v220_v49  ;;  %v512_v63 = vadd.f32 %v504_v51, %v496_v52  ;;  %v499_v9 = vmax.f32 %v229_v0, 0.0 }
 0x11f   :  { %v691_v55 = vpop.f32.mrf.mxu1  ;;  %v730_v56 = vpop.f32.mrf.mxu0 }
 0x120   :  { %v505_v57 = vmax.f32 %v469_v53, 0.0  ;;  %v497_v58 = vmax.f32 %v221_v54, 0.0  ;;  %v692_v59 = vadd.f32 %v691_v55, %v690_v50  ;;  %v242_v40 = vadd.f32 %v730_v56, %v957_v38 }
 0x121   :  { %v693_v61 = vpop.f32.mrf.mxu1  ;;  %v233_v62 = vpop.f32.mrf.mxu0 }
 0x122   :  { %v513_v1 = vadd.f32 %v505_v57, %v497_v58  ;;  %v474_v2 = vadd.f32 %v692_v59, %v962_v39  ;;  %v234_v16 = vadd.f32 %v957_v38, %v233_v62  ;;  %v502_v46 = vmax.f32 %v242_v40, 0.0 }
 0x123   :  { %v694_v3 = vpop.f32.mrf.mxu1  ;;  %v731_v4 = vpop.f32.mrf.mxu0 }
 0x124   :  { %v636_v5 = vpack.c.bf16 %v513_v1, %v512_v63  ;;  %v695_v6 = vadd.f32 %v694_v3, %v693_v61  ;;  %v506_v10 = vmax.f32 %v474_v2, 0.0  ;;  %v500_v27 = vmax.f32 %v234_v16, 0.0 }
 0x125   :  { %v696_v7 = vpop.f32.mrf.mxu1  ;;  %v236_v13 = vpop.f32.mrf.mxu0  ;;  %v245_v41 = vadd.f32 %v731_v4, %v957_v38 }
 0x126   :  { %637 = vst [vmem:[#allocation10] sm:$0xff] %v636_v5   ;;  %v477_v11 = vadd.f32 %v695_v6, %v962_v39  ;;  %v514_v18 = vadd.f32 %v506_v10, %v498_v8  ;;  %v237_v21 = vadd.f32 %v957_v38, %v236_v13 }
 0x127   :  { %v697_v12 = vpop.f32.mrf.mxu1  ;;  %v503_v47 = vmax.f32 %v245_v41, 0.0 }
 0x128   :  { %v507_v14 = vmax.f32 %v477_v11, 0.0  ;;  %v698_v15 = vadd.f32 %v697_v12, %v696_v7  ;;  %v501_v29 = vmax.f32 %v237_v21, 0.0 }
 0x129   :  { %v699_v17 = vpop.f32.mrf.mxu1 }
 0x12a   :  { %v515_v19 = vadd.f32 %v507_v14, %v499_v9  ;;  %v482_v20 = vadd.f32 %v698_v15, %v962_v39 }
 0x12b   :  { %v700_v22 = vpop.f32.mrf.mxu1 }
 0x12c   :  { %v641_v23 = vpack.c.bf16 %v515_v19, %v514_v18  ;;  %v701_v24 = vadd.f32 %v700_v22, %v699_v17  ;;  %v508_v26 = vmax.f32 %v482_v20, 0.0 }
 0x12d   :  { %v702_v25 = vpop.f32.mrf.mxu1 }
 0x12e   :  { %653 = vst [vmem:[#allocation10 + $0x8] sm:$0xff] %v641_v23   ;;  %v485_v28 = vadd.f32 %v701_v24, %v962_v39  ;;  %v516_v34 = vadd.f32 %v508_v26, %v500_v27 }
 0x12f   :  { %v703_v30 = vpop.f32.mrf.mxu1 }
 0x130   :  { %v509_v31 = vmax.f32 %v485_v28, 0.0  ;;  %v704_v32 = vadd.f32 %v703_v30, %v702_v25 }
 0x131   :  { %v705_v33 = vpop.f32.mrf.mxu1 }
 0x132   :  { %v517_v35 = vadd.f32 %v509_v31, %v501_v29  ;;  %v490_v36 = vadd.f32 %v704_v32, %v962_v39 }
 0x133   :  { %v706_v37 = vpop.f32.mrf.mxu1 }
 0x134   :  { %v646_v42 = vpack.c.bf16 %v517_v35, %v516_v34  ;;  %v707_v43 = vadd.f32 %v706_v37, %v705_v33  ;;  %v510_v44 = vmax.f32 %v490_v36, 0.0 }
 0x136   :  { %654 = vst [vmem:[#allocation10 + $0x10] sm:$0xff] %v646_v42   ;;  %v493_v45 = vadd.f32 %v707_v43, %v962_v39  ;;  %v518_v49 = vadd.f32 %v510_v44, %v502_v46 }
 0x138   :  { %v511_v48 = vmax.f32 %v493_v45, 0.0 }
 0x13a   :  { %v519_v50 = vadd.f32 %v511_v48, %v503_v47 }
 0x13c   :  { %v651_v51 = vpack.c.bf16 %v519_v50, %v518_v49 }
 0x13e   :  { %655 = vst [vmem:[#allocation10 + $0x18] sm:$0xff] %v651_v51  }
 0x13f   :  { %872 = shalt.err (!%p869_p10)
}
 0x140   :  { %571 = dma.vmem_to_hbm [thread:$0]  %s566_s5, 512, %s992_s6, [#allocation4], %s891_s26, %s891_s26, %s892_s27  }
 0x141   :  { %887 = dma.done.wait [#allocation4], 512  }
 0x142   :  { %888 = vsyncadd [#allocation4], 4294966784 }
 0x143   :  { %575 = vsyncpa [#allocation3], 1 }
 0x144   :  { %576 = vsyncpa [#allocation6], 1 }
 0x145   :  { %577 = vsyncpa [#allocation9], 1 }
 0x146   :  { %578 = vsyncpa [#allocation4], 1 }

</bundles_post_ra>
